<compile_context>
chip_gen: v5e
topology: v5e:2x2
jax: 0.10.0
libtpu: 0.0.40
codegen_flags: <defaults>
</compile_context>

<pallas_src>
import jax
import jax.numpy as jnp
from jax.experimental import pallas as pl
from jax.experimental.pallas import tpu as pltpu

HID1 = 256
HID2 = 128
OUT_PAD = 128  # padded (lane-dense) output width; column 0 is the real output


def _mlp_kernel(x_ref, lv_ref,
                w1a_ref, w1b_ref, b1_ref,
                w2_ref, b2_ref,
                w3_ref, b3_ref,
                o_ref):
    # Layer 1: split matmul over [x | label_vec] (concat never materialized).
    h1 = (jnp.dot(x_ref[...], w1a_ref[...], preferred_element_type=jnp.float32)
          + jnp.dot(lv_ref[...], w1b_ref[...], preferred_element_type=jnp.float32)
          + b1_ref[...])
    h1 = jnp.where(h1 > 0, h1, 0.2 * h1)                      # LeakyReLU(0.2), f32

    # Layer 2: 256 -> 128
    h2 = jnp.dot(h1.astype(jnp.bfloat16), w2_ref[...],
                 preferred_element_type=jnp.float32) + b2_ref[...]
    h2 = jnp.where(h2 > 0, h2, 0.2 * h2)

    # Layer 3: 128 -> 128 zero-padded head (only column 0 is meaningful);
    # keeps the output store lane-dense (unmasked vst).
    h3 = jnp.dot(h2.astype(jnp.bfloat16), w3_ref[...],
                 preferred_element_type=jnp.float32) + b3_ref[...]
    o_ref[...] = jax.nn.sigmoid(h3)


def _round_up(a, m):
    return ((a + m - 1) // m) * m


@jax.jit
def discriminator_forward(x, labels, params):
    """x: (B, n_features) f32, labels: (B,) int32 -> (B, 1) f32."""
    emb = params["label_embed"]                               # (n_labels, E)
    label_vec = jnp.take(emb, labels, axis=0)                 # (B, E) gather (glue)

    B, F = x.shape
    E = emb.shape[1]

    # Batch tiling: single block for small batches, 256-row blocks otherwise.
    if B <= 256:
        block_b = _round_up(max(B, 1), 8)
        Bp = block_b
    else:
        block_b = 256
        Bp = _round_up(B, block_b)
    pad = Bp - B

    x_p = jnp.pad(x.astype(jnp.bfloat16), ((0, pad), (0, 0)))
    lv_p = jnp.pad(label_vec.astype(jnp.bfloat16), ((0, pad), (0, 0)))

    w1 = params["w1"].astype(jnp.bfloat16)                    # (F+E, 256)
    w1a, w1b = w1[:F], w1[F:]                                 # (F,256), (E,256)
    b1 = params["b1"].astype(jnp.float32)                     # (1, 256)
    w2 = params["w2"].astype(jnp.bfloat16)                    # (256, 128)
    b2 = params["b2"].astype(jnp.float32)                     # (1, 128)
    w3 = params["w3"].astype(jnp.bfloat16)                    # (128, 1)
    b3 = params["b3"].astype(jnp.float32)                     # (1, 1)
    w3p = jnp.pad(w3, ((0, 0), (0, OUT_PAD - 1)))             # (128, 128)
    b3p = jnp.pad(b3, ((0, 0), (0, OUT_PAD - 1)))             # (1, 128)

    n_blocks = Bp // block_b

    batch_spec = lambda a: pl.BlockSpec((block_b, a.shape[1]), lambda i: (i, 0))
    weight_spec = lambda a: pl.BlockSpec(a.shape, lambda i: (0, 0))

    flops = 2 * Bp * (F * HID1 + E * HID1 + HID1 * HID2 + HID2 * OUT_PAD)
    transcendentals = Bp * OUT_PAD
    bytes_accessed = (x_p.size * 2 + lv_p.size * 2
                      + (w1a.size + w1b.size + w2.size + w3p.size) * 2
                      + (b1.size + b2.size + b3p.size) * 4
                      + Bp * OUT_PAD * 4)

    out = pl.pallas_call(
        _mlp_kernel,
        out_shape=jax.ShapeDtypeStruct((Bp, OUT_PAD), jnp.float32),
        grid=(n_blocks,),
        in_specs=[batch_spec(x_p), batch_spec(lv_p),
                  weight_spec(w1a), weight_spec(w1b), weight_spec(b1),
                  weight_spec(w2), weight_spec(b2),
                  weight_spec(w3p), weight_spec(b3p)],
        out_specs=pl.BlockSpec((block_b, OUT_PAD), lambda i: (i, 0)),
        compiler_params=pltpu.CompilerParams(
            dimension_semantics=("parallel",)),
        cost_estimate=pl.CostEstimate(flops=flops,
                                      transcendentals=transcendentals,
                                      bytes_accessed=bytes_accessed),
    )(x_p, lv_p, w1a, w1b, b1, w2, b2, w3p, b3p)

    return out[:B, :1]


def init_params(key, n_features, n_labels, label_emb_dim=4):
    """Deterministic synthetic parameters (shapes match the PyTorch module)."""
    ks = jax.random.split(key, 7)
    d_in = n_features + label_emb_dim

    def lin(kw, kb, fan_in, fan_out):
        # PyTorch Linear stores W as (out, in); we keep it transposed (in, out).
        bound = 1.0 / jnp.sqrt(fan_in)
        w = jax.random.uniform(kw, (fan_in, fan_out), jnp.float32, -bound, bound)
        b = jax.random.uniform(kb, (1, fan_out), jnp.float32, -bound, bound)
        return w, b

    w1, b1 = lin(ks[0], ks[1], d_in, HID1)
    w2, b2 = lin(ks[2], ks[3], HID1, HID2)
    w3, b3 = lin(ks[4], ks[5], HID2, 1)
    emb = jax.random.normal(ks[6], (n_labels, label_emb_dim), jnp.float32)
    return {"label_embed": emb, "w1": w1, "b1": b1,
            "w2": w2, "b2": b2, "w3": w3, "b3": b3}


def _reference(x, labels, params):
    lv = jnp.take(params["label_embed"], labels, axis=0)
    h = jnp.concatenate([x, lv], axis=1)
    h = h @ params["w1"] + params["b1"]
    h = jnp.where(h > 0, h, 0.2 * h)
    h = h @ params["w2"] + params["b2"]
    h = jnp.where(h > 0, h, 0.2 * h)
    h = h @ params["w3"] + params["b3"]
    return jax.nn.sigmoid(h)


if __name__ == "__main__":
    n_features, n_labels, label_emb_dim = 32, 10, 4

    key = jax.random.PRNGKey(0)
    kp, kx, kl = jax.random.split(key, 3)
    params = init_params(kp, n_features, n_labels, label_emb_dim)

    # Small batch (single block) and a ragged larger batch (multi-block + pad).
    for batch in (8, 300):
        kxb, klb = jax.random.split(jax.random.fold_in(kx, batch))
        x = jax.random.normal(kxb, (batch, n_features), jnp.float32)
        labels = jax.random.randint(klb, (batch,), 0, n_labels, jnp.int32)

        out = jax.block_until_ready(discriminator_forward(x, labels, params))
        ref = _reference(x, labels, params)

        assert out.shape == (batch, 1)
        # bf16 matmul operands -> loosened tolerance vs f32 reference.
        assert jnp.allclose(out, ref, atol=2e-2, rtol=2e-2), \
            f"mismatch vs JAX reference (batch={batch})"

    print("KERNEL_OK")
</pallas_src>

<mosaic_0001>
module attributes {stable_mosaic.version = 11 : i64} {
  func.func @_mlp_kernel(%arg0: i32, %arg1: memref<8x32xbf16, #tpu.memory_space<vmem>>, %arg2: memref<8x4xbf16, #tpu.memory_space<vmem>>, %arg3: memref<32x256xbf16, #tpu.memory_space<vmem>>, %arg4: memref<4x256xbf16, #tpu.memory_space<vmem>>, %arg5: memref<1x256xf32, #tpu.memory_space<vmem>>, %arg6: memref<256x128xbf16, #tpu.memory_space<vmem>>, %arg7: memref<1x128xf32, #tpu.memory_space<vmem>>, %arg8: memref<128x128xbf16, #tpu.memory_space<vmem>>, %arg9: memref<1x128xf32, #tpu.memory_space<vmem>>, %arg10: memref<8x128xf32, #tpu.memory_space<vmem>>) attributes {dimension_semantics = [#tpu.dimension_semantics<parallel>], iteration_bounds = array<i64: 1>, scalar_prefetch = 0 : i64, scratch_operands = 0 : i64, tpu.core_type = #tpu.core_type<tc>, window_params = [{transform_indices = @transform_0, window_bounds = array<i64: 8, 32>}, {transform_indices = @transform_1, window_bounds = array<i64: 8, 4>}, {pipeline_mode = #tpu.pipeline_mode<synchronous>, transform_indices = @transform_2, window_bounds = array<i64: 32, 256>}, {pipeline_mode = #tpu.pipeline_mode<synchronous>, transform_indices = @transform_3, window_bounds = array<i64: 4, 256>}, {pipeline_mode = #tpu.pipeline_mode<synchronous>, transform_indices = @transform_4, window_bounds = array<i64: 1, 256>}, {pipeline_mode = #tpu.pipeline_mode<synchronous>, transform_indices = @transform_5, window_bounds = array<i64: 256, 128>}, {pipeline_mode = #tpu.pipeline_mode<synchronous>, transform_indices = @transform_6, window_bounds = array<i64: 1, 128>}, {pipeline_mode = #tpu.pipeline_mode<synchronous>, transform_indices = @transform_7, window_bounds = array<i64: 128, 128>}, {pipeline_mode = #tpu.pipeline_mode<synchronous>, transform_indices = @transform_8, window_bounds = array<i64: 1, 128>}, {transform_indices = @transform_9, window_bounds = array<i64: 8, 128>}]} {
    %c0 = arith.constant 0 : index
    %c0_0 = arith.constant 0 : index
    %0 = vector.load %arg1[%c0, %c0_0] : memref<8x32xbf16, #tpu.memory_space<vmem>>, vector<8x32xbf16>
    %c0_1 = arith.constant 0 : index
    %c0_2 = arith.constant 0 : index
    %1 = vector.load %arg3[%c0_1, %c0_2] : memref<32x256xbf16, #tpu.memory_space<vmem>>, vector<32x256xbf16>
    %cst = arith.constant dense<0.000000e+00> : vector<8x256xf32>
    %2 = tpu.matmul %0, %1, %cst {dimension_numbers = #tpu.dot_dimension_numbers<[1], [0], [0], [1], [0, 0, 1, 1], [], []>} : vector<8x32xbf16>, vector<32x256xbf16>, vector<8x256xf32> -> vector<8x256xf32>
    %c0_3 = arith.constant 0 : index
    %c0_4 = arith.constant 0 : index
    %3 = vector.load %arg2[%c0_3, %c0_4] : memref<8x4xbf16, #tpu.memory_space<vmem>>, vector<8x4xbf16>
    %c0_5 = arith.constant 0 : index
    %c0_6 = arith.constant 0 : index
    %4 = vector.load %arg4[%c0_5, %c0_6] : memref<4x256xbf16, #tpu.memory_space<vmem>>, vector<4x256xbf16>
    %cst_7 = arith.constant dense<0.000000e+00> : vector<8x256xf32>
    %5 = tpu.matmul %3, %4, %cst_7 {dimension_numbers = #tpu.dot_dimension_numbers<[1], [0], [0], [1], [0, 0, 1, 1], [], []>} : vector<8x4xbf16>, vector<4x256xbf16>, vector<8x256xf32> -> vector<8x256xf32>
    %6 = arith.addf %2, %5 : vector<8x256xf32>
    %c0_8 = arith.constant 0 : index
    %c0_9 = arith.constant 0 : index
    %7 = vector.load %arg5[%c0_8, %c0_9] : memref<1x256xf32, #tpu.memory_space<vmem>>, vector<1x256xf32>
    %8 = vector.broadcast %7 : vector<1x256xf32> to vector<8x256xf32>
    %9 = arith.addf %6, %8 : vector<8x256xf32>
    %cst_10 = arith.constant 0.000000e+00 : f32
    %10 = vector.broadcast %cst_10 : f32 to vector<8x256xf32>
    %11 = arith.cmpf ogt, %9, %10 : vector<8x256xf32>
    %cst_11 = arith.constant 2.000000e-01 : f32
    %12 = vector.broadcast %cst_11 : f32 to vector<8x256xf32>
    %13 = arith.mulf %12, %9 : vector<8x256xf32>
    %14 = arith.select %11, %9, %13 : vector<8x256xi1>, vector<8x256xf32>
    %15 = arith.truncf %14 : vector<8x256xf32> to vector<8x256xbf16>
    %c0_12 = arith.constant 0 : index
    %c0_13 = arith.constant 0 : index
    %16 = vector.load %arg6[%c0_12, %c0_13] : memref<256x128xbf16, #tpu.memory_space<vmem>>, vector<256x128xbf16>
    %cst_14 = arith.constant dense<0.000000e+00> : vector<8x128xf32>
    %17 = tpu.matmul %15, %16, %cst_14 {dimension_numbers = #tpu.dot_dimension_numbers<[1], [0], [0], [1], [0, 0, 1, 1], [], []>} : vector<8x256xbf16>, vector<256x128xbf16>, vector<8x128xf32> -> vector<8x128xf32>
    %c0_15 = arith.constant 0 : index
    %c0_16 = arith.constant 0 : index
    %18 = vector.load %arg7[%c0_15, %c0_16] : memref<1x128xf32, #tpu.memory_space<vmem>>, vector<1x128xf32>
    %19 = vector.broadcast %18 : vector<1x128xf32> to vector<8x128xf32>
    %20 = arith.addf %17, %19 : vector<8x128xf32>
    %cst_17 = arith.constant 0.000000e+00 : f32
    %21 = vector.broadcast %cst_17 : f32 to vector<8x128xf32>
    %22 = arith.cmpf ogt, %20, %21 : vector<8x128xf32>
    %cst_18 = arith.constant 2.000000e-01 : f32
    %23 = vector.broadcast %cst_18 : f32 to vector<8x128xf32>
    %24 = arith.mulf %23, %20 : vector<8x128xf32>
    %25 = arith.select %22, %20, %24 : vector<8x128xi1>, vector<8x128xf32>
    %26 = arith.truncf %25 : vector<8x128xf32> to vector<8x128xbf16>
    %c0_19 = arith.constant 0 : index
    %c0_20 = arith.constant 0 : index
    %27 = vector.load %arg8[%c0_19, %c0_20] : memref<128x128xbf16, #tpu.memory_space<vmem>>, vector<128x128xbf16>
    %cst_21 = arith.constant dense<0.000000e+00> : vector<8x128xf32>
    %28 = tpu.matmul %26, %27, %cst_21 {dimension_numbers = #tpu.dot_dimension_numbers<[1], [0], [0], [1], [0, 0, 1, 1], [], []>} : vector<8x128xbf16>, vector<128x128xbf16>, vector<8x128xf32> -> vector<8x128xf32>
    %c0_22 = arith.constant 0 : index
    %c0_23 = arith.constant 0 : index
    %29 = vector.load %arg9[%c0_22, %c0_23] : memref<1x128xf32, #tpu.memory_space<vmem>>, vector<1x128xf32>
    %30 = vector.broadcast %29 : vector<1x128xf32> to vector<8x128xf32>
    %31 = arith.addf %28, %30 : vector<8x128xf32>
    %32 = arith.negf %31 : vector<8x128xf32>
    %33 = math.exp %32 : vector<8x128xf32>
    %cst_24 = arith.constant 1.000000e+00 : f32
    %34 = vector.broadcast %cst_24 : f32 to vector<8x128xf32>
    %35 = arith.addf %34, %33 : vector<8x128xf32>
    %36 = arith.divf %34, %35 : vector<8x128xf32>
    %c0_25 = arith.constant 0 : index
    %c0_26 = arith.constant 0 : index
    %37 = vector.load %arg10[%c0_25, %c0_26] : memref<8x128xf32, #tpu.memory_space<vmem>>, vector<8x128xf32>
    tpu.vector_store %arg10[%c0_25, %c0_26], %36 {strides = array<i32>} : memref<8x128xf32, #tpu.memory_space<vmem>>, vector<8x128xf32>,
    return
  }
  func.func @transform_0(%arg0: i32) -> (i32, i32) {
    %c0_i32 = arith.constant 0 : i32
    %c0_i32_0 = arith.constant 0 : i32
    return %arg0, %c0_i32 : i32, i32
  }
  func.func @transform_1(%arg0: i32) -> (i32, i32) {
    %c0_i32 = arith.constant 0 : i32
    %c0_i32_0 = arith.constant 0 : i32
    return %arg0, %c0_i32 : i32, i32
  }
  func.func @transform_2(%arg0: i32) -> (i32, i32) {
    %c0_i32 = arith.constant 0 : i32
    %c0_i32_0 = arith.constant 0 : i32
    %c0_i32_1 = arith.constant 0 : i32
    return %c0_i32, %c0_i32_0 : i32, i32
  }
  func.func @transform_3(%arg0: i32) -> (i32, i32) {
    %c0_i32 = arith.constant 0 : i32
    %c0_i32_0 = arith.constant 0 : i32
    %c0_i32_1 = arith.constant 0 : i32
    return %c0_i32, %c0_i32_0 : i32, i32
  }
  func.func @transform_4(%arg0: i32) -> (i32, i32) {
    %c0_i32 = arith.constant 0 : i32
    %c0_i32_0 = arith.constant 0 : i32
    %c0_i32_1 = arith.constant 0 : i32
    return %c0_i32, %c0_i32_0 : i32, i32
  }
  func.func @transform_5(%arg0: i32) -> (i32, i32) {
    %c0_i32 = arith.constant 0 : i32
    %c0_i32_0 = arith.constant 0 : i32
    %c0_i32_1 = arith.constant 0 : i32
    return %c0_i32, %c0_i32_0 : i32, i32
  }
  func.func @transform_6(%arg0: i32) -> (i32, i32) {
    %c0_i32 = arith.constant 0 : i32
    %c0_i32_0 = arith.constant 0 : i32
    %c0_i32_1 = arith.constant 0 : i32
    return %c0_i32, %c0_i32_0 : i32, i32
  }
  func.func @transform_7(%arg0: i32) -> (i32, i32) {
    %c0_i32 = arith.constant 0 : i32
    %c0_i32_0 = arith.constant 0 : i32
    %c0_i32_1 = arith.constant 0 : i32
    return %c0_i32, %c0_i32_0 : i32, i32
  }
  func.func @transform_8(%arg0: i32) -> (i32, i32) {
    %c0_i32 = arith.constant 0 : i32
    %c0_i32_0 = arith.constant 0 : i32
    %c0_i32_1 = arith.constant 0 : i32
    return %c0_i32, %c0_i32_0 : i32, i32
  }
  func.func @transform_9(%arg0: i32) -> (i32, i32) {
    %c0_i32 = arith.constant 0 : i32
    %c0_i32_0 = arith.constant 0 : i32
    return %arg0, %c0_i32 : i32, i32
  }
}

</mosaic_0001>

<bundles_post_ra>
// kernel: discriminator_forward.1
= control target key start
LH: loop header
LB: loop body
LE: loop exit
PB: predicated region body
PF: predicated region fallthrough
CT: control target
= control target key end

     0   :  { %vm99_vm0 = vcmask 261120   ;;  %vm48_vm1 = vcmask 1041408   ;;  %vm44_vm2 = vcmask 31744   ;;  %s732_s2 = inlined_call_operand.vmem [shape: bf16[32,256], index: 2, kind: input, shape index: {}]   ;;  %s733_s3 = inlined_call_operand.vmem [shape: bf16[4,256], index: 3, kind: input, shape index: {}]   ;;  %s734_s0 = inlined_call_operand.vmem [shape: bf16[8,32], index: 0, kind: input, shape index: {}]   ;;  %s735_s5 = inlined_call_operand.vmem [shape: bf16[256,128], index: 5, kind: input, shape index: {}]   ;;  %s736_s1 = inlined_call_operand.vmem [shape: bf16[8,4], index: 1, kind: input, shape index: {}]   ;;  %s737_s6 = inlined_call_operand.vmem [shape: f32[1,128], index: 6, kind: input, shape index: {}]   ;;  %s738_s7 = inlined_call_operand.vmem [shape: bf16[128,128], index: 7, kind: input, shape index: {}]   ;;  %s739_s4 = inlined_call_operand.vmem [shape: f32[1,256], index: 4, kind: input, shape index: {}]   ;;  %s740_s8 = inlined_call_operand.vmem [shape: f32[1,128], index: 8, kind: input, shape index: {}]   ;;  %s741_s9 = inlined_call_operand.vmem [shape: f32[8,128], index: 9, kind: output, shape index: {}]  }
   0x1   :  { %v424_v0 = vld [vmem:[%s732_s2 + $0x10] sm:$0xf]  ;;  %v532_v1 = vld [vmem:[%s732_s2 + $0x14] sm:$0xf0]  ;;  %v416_v2 = vld [vmem:[%s732_s2] sm:$0xf] }
   0x2   :  { %v425_v3 = vor.u32 %v532_v1, %v424_v0  ;;  %v530_v4 = vld [vmem:[%s732_s2 + $0x4] sm:$0xf0]  ;;  %v531_v5 = vld [vmem:[%s732_s2 + $0x14] sm:$0xf]  ;;  %v426_v6 = vld [vmem:[%s732_s2 + $0x18] sm:$0xf0] }
   0x3   :  { %v39_v7 = vld [vmem:[%s733_s3] sm:$0xf]  ;;  %v417_v8 = vor.u32 %v530_v4, %v416_v2  ;;  %v429_v9 = vor.u32 %v531_v5, %v426_v6  ;;  %v529_v10 = vld [vmem:[%s732_s2 + $0x4] sm:$0xf]  ;;  %v418_v11 = vld [vmem:[%s732_s2 + $0x8] sm:$0xf0] }
   0x4   :  { %109 = vmatpush.bf16.msra.mxu3 %v425_v3  ;;  %41 = vst [vmem:[#allocation1] ss:$4 sm:$0xff] %v39_v7  ;;  %v33_v12 = vld [vmem:[%s734_s0] sm:$0xf]  ;;  %v421_v13 = vor.u32 %v529_v10, %v418_v11  ;;  %v540_v14 = vld [vmem:[%s735_s5 + $0x38] sm:$0xff]  ;;  %v539_v21 = vld [vmem:[%s735_s5 + $0x30] sm:$0xff] }
   0x5   :  { %v548_v15 = vld [vmem:[%s735_s5 + $0x78] sm:$0xff]  ;;  %v38_v20 = vld [vmem:[%s736_s1] sm:$0xf]  ;;  %v547_v22 = vld [vmem:[%s735_s5 + $0x70] sm:$0xff] }
   0x6   :  { %v538_v23 = vld [vmem:[%s735_s5 + $0x28] sm:$0xff]  ;;  %v537_v24 = vld [vmem:[%s735_s5 + $0x20] sm:$0xff]  ;;  %v536_v25 = vld [vmem:[%s735_s5 + $0x18] sm:$0xff] }
   0x7   :  { %v535_v26 = vld [vmem:[%s735_s5 + $0x10] sm:$0xff]  ;;  %v534_v27 = vld [vmem:[%s735_s5 + $0x8] sm:$0xff]  ;;  %v533_v29 = vld [vmem:[%s735_s5] sm:$0xff] }
   0x8   :  { %110 = vmatpush.bf16.msra.mxu3 %v417_v8  ;;  %v546_v28 = vld [vmem:[%s735_s5 + $0x68] sm:$0xff]  ;;  %v545_v30 = vld [vmem:[%s735_s5 + $0x60] sm:$0xff]  ;;  %v544_v31 = vld [vmem:[%s735_s5 + $0x58] sm:$0xff] }
   0x9   :  { %v543_v32 = vld [vmem:[%s735_s5 + $0x50] sm:$0xff]  ;;  %v542_v33 = vld [vmem:[%s735_s5 + $0x48] sm:$0xff]  ;;  %v541_v34 = vld [vmem:[%s735_s5 + $0x40] sm:$0xff] }
   0xa   :  { %v556_v35 = vld [vmem:[%s738_s7 + $0x38] sm:$0xff]  ;;  %v129_v36 = vld [vmem:[%s739_s4] sm:$0x3]  ;;  %v555_v37 = vld [vmem:[%s738_s7 + $0x30] sm:$0xff] }
   0xb   :  { %430 = vmatmul.msk.bf16.vlgmr.msra.gmra.mxu3 %vm99_vm0, %v33_v12  ;;  %v42_v16 = vld.sshfl [vmem:[#allocation1] sm:$0xff pattern:$0x73625140]  ;;  %v43_v17 = vld.sshfl [vmem:[#allocation1 + $0x8] sm:$0xff pattern:$0x73625140]  ;;  %375 = vmatpush.bf16.msra.mxu2 %v556_v35 }
   0xc   :  { %122 = vmatpush.bf16.msrb.mxu3 %v429_v9  ;;  %v49_v18 = vsel %vm48_vm1, %v42_v16, 0  ;;  %v51_v19 = vsel %vm48_vm1, %v43_v17, 0  ;;  %v131_v39 = vperm.slane %v129_v36, 0  ;;  %v132_v50 = vperm.slane %v129_v36, 1  ;;  %v554_v58 = vld [vmem:[%s738_s7 + $0x28] sm:$0xff]  ;;  %v553_v59 = vld [vmem:[%s738_s7 + $0x20] sm:$0xff] }
   0xd   :  { %60 = vmatpush.bf16.msra.mxu0 %v49_v18  ;;  %73 = vmatpush.bf16.msra.mxu1 %v51_v19  ;;  %v552_v60 = vld [vmem:[%s738_s7 + $0x18] sm:$0xff]  ;;  %v551_v61 = vld [vmem:[%s738_s7 + $0x10] sm:$0xff]  ;;  %v550_v62 = vld [vmem:[%s738_s7 + $0x8] sm:$0xff] }
   0xe   :  { %v549_v63 = vld [vmem:[%s738_s7] sm:$0xff] }
   0xf   :  { %376 = vmatpush.bf16.msra.mxu2 %v555_v37  ;;  %v557_v2 = vld [vmem:[%s737_s6] ss:$0 sm:$0xff] }
  0x10   :  { %123 = vmatpush.bf16.msrb.mxu3 %v421_v13  ;;  %412 = vmatmul.msk.bf16.vlgmr.msra.gmra.mxu0 %vm44_vm2, %v38_v20  ;;  %v558_v10 = vld [vmem:[%s740_s8] ss:$0 sm:$0xff] }
  0x11   :  { %277 = vmatpush.bf16.msrb.mxu0 %v540_v14  ;;  %290 = vmatpush.bf16.msrb.mxu1 %v548_v15 }
  0x12   :  { %413 = vmatmul.msk.bf16.vlgmr.msra.gmra.mxu1 %vm44_vm2, %v38_v20 }
  0x13   :  { %377 = vmatpush.bf16.msra.mxu2 %v554_v58 }
  0x15   :  { %278 = vmatpush.bf16.msrb.mxu0 %v539_v21  ;;  %291 = vmatpush.bf16.msrb.mxu1 %v547_v22 }
  0x17   :  { %378 = vmatpush.bf16.msra.mxu2 %v553_v59 }
  0x19   :  { %279 = vmatpush.bf16.msrb.mxu0 %v538_v23  ;;  %292 = vmatpush.bf16.msrb.mxu1 %v546_v28 }
  0x1b   :  { %431 = vmatmul.msk.bf16.vlgmr.msrb.gmra.mxu3 %vm99_vm0, %v33_v12  ;;  %379 = vmatpush.bf16.msra.mxu2 %v552_v60 }
  0x1d   :  { %280 = vmatpush.bf16.msrb.mxu0 %v537_v24  ;;  %293 = vmatpush.bf16.msrb.mxu1 %v545_v30 }
  0x1f   :  { %380 = vmatpush.bf16.msra.mxu2 %v551_v61 }
  0x21   :  { %281 = vmatpush.bf16.msrb.mxu0 %v536_v25  ;;  %294 = vmatpush.bf16.msrb.mxu1 %v544_v31 }
  0x23   :  { %381 = vmatpush.bf16.msra.mxu2 %v550_v62 }
  0x25   :  { %282 = vmatpush.bf16.msrb.mxu0 %v535_v26  ;;  %295 = vmatpush.bf16.msrb.mxu1 %v543_v32 }
  0x27   :  { %382 = vmatpush.bf16.msra.mxu2 %v549_v63 }
  0x29   :  { %283 = vmatpush.bf16.msrb.mxu0 %v534_v27  ;;  %296 = vmatpush.bf16.msrb.mxu1 %v542_v33 }
  0x2d   :  { %284 = vmatpush.bf16.msrb.mxu0 %v533_v29  ;;  %297 = vmatpush.bf16.msrb.mxu1 %v541_v34 }
  0x8d   :  { %v62_v38 = vpop.f32.mrf.mxu0 }
  0x8e   :  { %v112_v40 = vpop.f32.mrf.mxu3 }
  0x8f   :  { %v75_v41 = vpop.f32.mrf.mxu1  ;;  %v113_v42 = vadd.f32 %v112_v40, %v62_v38 }
  0x91   :  { %v135_v43 = vadd.f32 %v131_v39, %v113_v42 }
  0x93   :  { %v139_v44 = vmul.f32 0.2, %v135_v43  ;;  %vm137_vm3 = vcmp.gt.f32.partialorder %v135_v43, 0.0 }
  0x95   :  { %v141_v45 = vsel %vm137_vm3, %v135_v43, %v139_v44  ;;  %v64_v46 = vpop.f32.mrf.mxu0 }
  0x96   :  { %v114_v47 = vpop.f32.mrf.mxu3  ;;  %v143_v48 = vpack.c.bf16 %v141_v45, %v141_v45 }
  0x97   :  { %v77_v49 = vpop.f32.mrf.mxu1 }
  0x98   :  { %285 = vmatmul.bf16.vlgmr.msrb.gmra.mxu0 %v143_v48 }
  0x9e   :  { %v125_v51 = vpop.f32.mrf.mxu3 }
  0x9f   :  { %v126_v52 = vadd.f32 %v125_v51, %v75_v41 }
  0xa1   :  { %v136_v53 = vadd.f32 %v132_v50, %v126_v52 }
  0xa3   :  { %v140_v54 = vmul.f32 0.2, %v136_v53  ;;  %vm138_vm4 = vcmp.gt.f32.partialorder %v136_v53, 0.0 }
  0xa5   :  { %v142_v55 = vsel %vm138_vm4, %v136_v53, %v140_v54 }
  0xa6   :  { %v127_v56 = vpop.f32.mrf.mxu3  ;;  %v144_v57 = vpack.c.bf16 %v142_v55, %v142_v55 }
  0xa8   :  { %298 = vmatmul.bf16.vlgmr.msrb.gmra.mxu1 %v144_v57 }
 0x115   :  { %v286_v0 = vpop.f32.mrf.mxu0 }
 0x116   :  { %v287_v3 = vadd.f32 %v557_v2, %v286_v0 }
 0x11d   :  { %v288_v1 = vpop.f32.mrf.mxu0 }
 0x125   :  { %v299_v4 = vpop.f32.mrf.mxu1 }
 0x126   :  { %v300_v5 = vadd.f32 %v299_v4, %v287_v3 }
 0x128   :  { %v304_v6 = vmul.f32 0.2, %v300_v5  ;;  %vm303_vm5 = vcmp.gt.f32.partialorder %v300_v5, 0.0 }
 0x12a   :  { %v305_v7 = vsel %vm303_vm5, %v300_v5, %v304_v6 }
 0x12b   :  { %v306_v8 = vpack.c.bf16 %v305_v7, %v305_v7 }
 0x12d   :  { %v301_v9 = vpop.f32.mrf.mxu1  ;;  %383 = vmatmul.bf16.vlgmr.msra.gmra.mxu2 %v306_v8 }
 0x1b0   :  { %v384_v11 = vpop.f32.mrf.mxu2 }
 0x1b1   :  { %v385_v12 = vadd.f32 %v558_v10, %v384_v11 }
 0x1b3   :  { %v528_v13 = vmul.f32 -1.442695, %v385_v12 }
 0x1b5   :  { %559 = vpow2.f32 %v528_v13 }
 0x1b8   :  { %v386_v14 = vpop.f32.mrf.mxu2 }
 0x1bb   :  { %v560_v15 = vpop.eup %559 }
 0x1bc   :  { %v391_v16 = vadd.f32 1.0, %v560_v15 }
 0x1be   :  { %561 = vrcp.f32 %v391_v16  ;;  %v403_v20 = vand.u32 2147483648, %v391_v16  ;;  %v401_v22 = vand.u32 2147483647, %v391_v16  ;;  %vm397_vm7 = vweird.f32 %v391_v16 }
 0x1c0   :  { %v404_v24 = vor.u32 1.1754944e-38, %v403_v20  ;;  %vm402_vm9 = vcmp.eq.f32.partialorder %v401_v22, 8.507059e+37 }
 0x1c4   :  { %v562_v17 = vpop.eup %561 }
 0x1c5   :  { %v393_v18 = vmul.f32 %v562_v17, %v391_v16  ;;  %vm398_vm6 = vweird.f32 %v562_v17 }
 0x1c6   :  { %vm399_vm8 = vmor %vm397_vm7, %vm398_vm6 }
 0x1c7   :  { %v394_v19 = vsub.f32 1.0, %v393_v18 }
 0x1c9   :  { %v395_v21 = vmul.f32 %v562_v17, %v394_v19 }
 0x1cb   :  { %v396_v23 = vadd.f32 %v562_v17, %v395_v21 }
 0x1cd   :  { %v400_v25 = vsel %vm399_vm8, %v562_v17, %v396_v23 }
 0x1ce   :  { %v405_v26 = vsel %vm402_vm9, %v404_v24, %v400_v25 }
 0x1cf   :  { %407 = vst [vmem:[%s741_s9] sm:$0xff] %v405_v26 }

</bundles_post_ra>
